<compile_context>
chip_gen: v7x
topology: tpu7x:2x2x1
jax: 0.10.0
libtpu: 0.0.40
codegen_flags: <defaults>
</compile_context>

<pallas_src>
import functools

import jax
import jax.numpy as jnp
from jax.experimental import pallas as pl
from jax.experimental.pallas import tpu as pltpu

_NEG_BIG = -1e30


def _loss_kernel(rows_ref, cols_ref, spoof_ref, out_ref,
                 m_sc, l_sc, s_sc, *, n_live, n_spoof):
    # rows_ref : (TL, Dp) bf16 -- live row tile, pre-normalized, pre-scaled 1/T
    # cols_ref : (TC, Dp) bf16 -- streamed live column tile, pre-normalized
    # spoof_ref: (Sp, Dp) bf16 -- pooled spoof features, pre-normalized
    # out_ref  : (1, 128) f32  -- lane-dense per-row-tile partial sum
    # m_sc/l_sc/s_sc : (TL, 1) f32 online-softmax accumulators
    i = pl.program_id(0)
    k = pl.program_id(1)
    last_k = pl.num_programs(1) - 1

    @pl.when(k == 0)
    def _():
        m_sc[...] = jnp.full_like(m_sc, _NEG_BIG)
        l_sc[...] = jnp.zeros_like(l_sc)
        s_sc[...] = jnp.zeros_like(s_sc)

    rows = rows_ref[...]
    cols = cols_ref[...]
    tl = rows.shape[0]
    tc = cols.shape[0]

    # A @ B.T (Q@K^T-style contraction on the feature axis); bf16 in, f32 acc.
    dn = (((1,), (1,)), ((), ()))
    sim = jax.lax.dot_general(rows, cols, dn,
                              preferred_element_type=jnp.float32)   # (TL, TC)

    col_idx = jax.lax.broadcasted_iota(jnp.int32, (1, tc), 1) + k * tc
    col_valid = col_idx < n_live
    sim_m = jnp.where(col_valid, sim, _NEG_BIG)

    # --- online softmax update (exp(-1e30 - m) underflows exactly to 0) -----
    m_prev = m_sc[...]
    m_new = jnp.maximum(m_prev, jnp.max(sim_m, axis=1, keepdims=True))
    alpha = jnp.exp(m_prev - m_new)
    l_new = alpha * l_sc[...] + jnp.sum(jnp.exp(sim_m - m_new),
                                        axis=1, keepdims=True)
    # raw (un-shifted) row sum over valid live columns; the shift and the
    # log-denominator are applied once at the end, so no rescale is needed.
    s_new = s_sc[...] + jnp.sum(jnp.where(col_valid, sim, 0.0),
                                axis=1, keepdims=True)
    m_sc[...] = m_new
    l_sc[...] = l_new
    s_sc[...] = s_new

    @pl.when(k == last_k)
    def _():
        # m_new is final here: sim_max only depends on live-live similarities.
        spoof = spoof_ref[...]
        sp = spoof.shape[0]
        sim_s = jax.lax.dot_general(rows, spoof, dn,
                                    preferred_element_type=jnp.float32)
        s_valid = jax.lax.broadcasted_iota(jnp.int32, (1, sp), 1) < n_spoof
        sim_s_m = jnp.where(s_valid, sim_s, _NEG_BIG)

        reweight = float(n_live) / float(n_spoof)
        denom = l_new + reweight * jnp.sum(jnp.exp(sim_s_m - m_new),
                                           axis=1, keepdims=True)
        log_denom = jnp.log(denom + 1e-8)
        # sum_j [(sim_ij - m_i) - log_denom_i] over the n_live valid columns
        row_contrib = s_new - float(n_live) * (m_new + log_denom)   # (TL, 1)

        row_idx = jax.lax.broadcasted_iota(jnp.int32, (tl, 1), 0) + i * tl
        row_valid = row_idx < n_live
        partial = jnp.sum(jnp.where(row_valid, row_contrib, 0.0),
                          axis=0, keepdims=True)                    # (1, 1)
        out_ref[...] = jnp.broadcast_to(partial, out_ref.shape)     # lane-dense


def _round_up(x, m):
    return max(m, -(-x // m) * m)


def live_patch_spoof_sample_loss(features, labels, *, temperature=0.07,
                                 spoof_average_pool=True, sampling_rate=1.0):
    """JAX/Pallas equivalent of LivePatchSpoofSampleLoss_ViT.forward."""
    features = jnp.asarray(features, jnp.float32)
    labels = jnp.asarray(labels)
    _, P, D = features.shape

    # ---- XLA glue: dynamic-shape selection, pooling, f32 normalization,
    #      1/temperature fold into the row operand, bf16 cast, zero padding.
    live = features[labels == 1].reshape(-1, D)              # (L, D)
    spoof_pat = features[labels == 0]                         # (S, P, D)
    spoof = (jnp.mean(spoof_pat, axis=1) if spoof_average_pool
             else jnp.max(spoof_pat, axis=1))                 # (S, D)
    # TODO(synk): sampling_rate < 1.0 (random dynamic-shape subsampling of the
    # live rows) is not implemented; the default sampling_rate=1.0 is exact.

    L = int(live.shape[0])
    S = int(spoof.shape[0])
    if L == 0 or S == 0:
        raise ValueError("need at least one live and one spoof sample")

    def l2n(x):  # F.normalize(p=2, dim=1, eps=1e-12), kept in f32
        return x / jnp.maximum(jnp.linalg.norm(x, axis=1, keepdims=True), 1e-12)

    inv_t = 1.0 / (temperature + 1e-8)
    live_n = l2n(live)
    spoof_n = l2n(spoof)

    Lp = _round_up(L, 128)
    Sp = _round_up(S, 128)
    Dp = _round_up(D, 128)
    # Row tiles feed the "parallel" axis (keep >=2 tiles when possible for
    # v7x's two TensorCores); live columns are streamed on the "arbitrary"
    # axis so VMEM stays bounded as L grows.
    TL = 256 if (Lp % 256 == 0 and Lp // 256 >= 2) else 128
    TC = next(c for c in (512, 256, 128) if Lp % c == 0)
    n_row_tiles = Lp // TL
    n_col_tiles = Lp // TC

    rows_p = jnp.zeros((Lp, Dp), jnp.bfloat16).at[:L, :D].set(
        (live_n * inv_t).astype(jnp.bfloat16))
    cols_p = jnp.zeros((Lp, Dp), jnp.bfloat16).at[:L, :D].set(
        live_n.astype(jnp.bfloat16))
    spoof_p = jnp.zeros((Sp, Dp), jnp.bfloat16).at[:S, :D].set(
        spoof_n.astype(jnp.bfloat16))

    kernel = functools.partial(_loss_kernel, n_live=L, n_spoof=S)

    # Bytes: each row tile is loaded once (constant index over k), the live
    # column matrix is re-streamed once per row tile, spoof is loaded once.
    cost = pl.CostEstimate(
        flops=2 * Lp * Dp * (Lp + Sp),
        transcendentals=Lp * (Lp + Sp) + 2 * Lp,
        bytes_accessed=(Lp * Dp * 2 + n_row_tiles * Lp * Dp * 2
                        + Sp * Dp * 2 + n_row_tiles * 128 * 4))

    # Generation-aware VMEM budget (v7x has only 64 MiB per TensorCore).
    try:
        info = pltpu.get_tpu_info()
        vmem_cap = int(getattr(info, "vmem_capacity_bytes", 64 * 1024 * 1024))
    except Exception:
        vmem_cap = 64 * 1024 * 1024
    vmem_needed = (2 * 2 * (TL * Dp + TC * Dp + Sp * Dp)   # double-buffered bf16 inputs
                   + 2 * 4 * 128                           # output block
                   + 3 * 4 * TL * 128                      # scratch (lane-padded)
                   + 6 * 4 * TL * max(TC, Sp)              # f32 sim/exp temporaries
                   + (4 << 20))                            # headroom
    vmem_limit = int(min(max(vmem_needed, 16 * 1024 * 1024),
                         (vmem_cap * 3) // 4))

    partials = pl.pallas_call(
        kernel,
        out_shape=jax.ShapeDtypeStruct((n_row_tiles, 128), jnp.float32),
        grid_spec=pltpu.PrefetchScalarGridSpec(
            num_scalar_prefetch=0,
            grid=(n_row_tiles, n_col_tiles),
            in_specs=[
                pl.BlockSpec((TL, Dp), lambda i, k: (i, 0)),  # row tile (resident over k)
                pl.BlockSpec((TC, Dp), lambda i, k: (0, k)),  # streamed live columns
                pl.BlockSpec((Sp, Dp), lambda i, k: (0, 0)),  # pooled spoof (resident)
            ],
            out_specs=pl.BlockSpec((1, 128), lambda i, k: (i, 0)),
            scratch_shapes=[pltpu.VMEM((TL, 1), jnp.float32),    # running max
                            pltpu.VMEM((TL, 1), jnp.float32),    # running denominator
                            pltpu.VMEM((TL, 1), jnp.float32)]),  # running raw sum
        compiler_params=pltpu.CompilerParams(
            dimension_semantics=("parallel", "arbitrary"),
            vmem_limit_bytes=vmem_limit),
        cost_estimate=cost,
    )(rows_p, cols_p, spoof_p)

    return -jnp.sum(partials[:, 0]) / float(L * L)


def _reference(features, labels, temperature=0.07, spoof_average_pool=True):
    """Pure-JAX f32 reference mirroring the PyTorch forward (sampling_rate=1)."""
    D = features.shape[-1]
    live = features[labels == 1].reshape(-1, D)
    live = live / jnp.maximum(jnp.linalg.norm(live, axis=1, keepdims=True), 1e-12)
    spoof = features[labels == 0]
    spoof = spoof.mean(axis=1) if spoof_average_pool else spoof.max(axis=1)
    spoof = spoof / jnp.maximum(jnp.linalg.norm(spoof, axis=1, keepdims=True), 1e-12)
    sll = live @ live.T / (temperature + 1e-8)
    sls = live @ spoof.T / (temperature + 1e-8)
    m = sll.max(axis=1, keepdims=True)
    sll = sll - m
    sls = sls - m
    rew = sll.shape[1] / sls.shape[1]
    denom = jnp.exp(sll).sum(1, keepdims=True) + rew * jnp.exp(sls).sum(1, keepdims=True)
    return -(sll - jnp.log(denom + 1e-8)).mean()


if __name__ == "__main__":
    key = jax.random.PRNGKey(0)
    B, P, D = 4, 8, 32
    features = jax.random.normal(key, (B, P, D), dtype=jnp.float32)
    labels = jnp.array([1, 0, 1, 0], dtype=jnp.int32)

    loss = live_patch_spoof_sample_loss(features, labels,
                                        temperature=0.07,
                                        spoof_average_pool=True,
                                        sampling_rate=1.0)
    loss = jax.block_until_ready(loss)

    ref = jax.block_until_ready(_reference(features, labels))
    assert jnp.isfinite(loss), "non-finite loss"
    # bf16 MXU operands (f32 accumulation) -> compare with a relative tolerance.
    tol = 2e-2 * max(1.0, abs(float(ref))) + 1e-2
    assert abs(float(loss) - float(ref)) < tol, (float(loss), float(ref))
    print("KERNEL_OK")
</pallas_src>

<mosaic_0001>
module attributes {stable_mosaic.version = 11 : i64} {
  func.func @_loss_kernel(%arg0: i32, %arg1: i32, %arg2: memref<128x128xbf16, #tpu.memory_space<vmem>>, %arg3: memref<128x128xbf16, #tpu.memory_space<vmem>>, %arg4: memref<128x128xbf16, #tpu.memory_space<vmem>>, %arg5: memref<1x128xf32, #tpu.memory_space<vmem>>, %arg6: memref<128x1xf32, #tpu.memory_space<vmem>>, %arg7: memref<128x1xf32, #tpu.memory_space<vmem>>, %arg8: memref<128x1xf32, #tpu.memory_space<vmem>>) attributes {dimension_semantics = [#tpu.dimension_semantics<parallel>, #tpu.dimension_semantics<arbitrary>], iteration_bounds = array<i64: 1, 1>, scalar_prefetch = 0 : i64, scratch_operands = 3 : i64, tpu.core_type = #tpu.core_type<tc>, window_params = [{transform_indices = @transform_0, window_bounds = array<i64: 128, 128>}, {transform_indices = @transform_1, window_bounds = array<i64: 128, 128>}, {pipeline_mode = #tpu.pipeline_mode<synchronous>, transform_indices = @transform_2, window_bounds = array<i64: 128, 128>}, {transform_indices = @transform_3, window_bounds = array<i64: 1, 128>}]} {
    %c0_i32 = arith.constant 0 : i32
    %0 = arith.cmpi eq, %arg1, %c0_i32 : i32
    %1 = arith.extui %0 : i1 to i32
    %c0_i32_0 = arith.constant 0 : i32
    %2 = arith.cmpi ne, %1, %c0_i32_0 : i32
    scf.if %2 {
      %cst_23 = arith.constant -1.000000e+30 : f32
      %44 = vector.broadcast %cst_23 : f32 to vector<128x1xf32>
      %c0_24 = arith.constant 0 : index
      %c0_25 = arith.constant 0 : index
      %45 = vector.load %arg6[%c0_24, %c0_25] : memref<128x1xf32, #tpu.memory_space<vmem>>, vector<128x1xf32>
      tpu.vector_store %arg6[%c0_24, %c0_25], %44 {strides = array<i32>} : memref<128x1xf32, #tpu.memory_space<vmem>>, vector<128x1xf32>,
      %cst_26 = arith.constant 0.000000e+00 : f32
      %46 = vector.broadcast %cst_26 : f32 to vector<128x1xf32>
      %c0_27 = arith.constant 0 : index
      %c0_28 = arith.constant 0 : index
      %47 = vector.load %arg7[%c0_27, %c0_28] : memref<128x1xf32, #tpu.memory_space<vmem>>, vector<128x1xf32>
      tpu.vector_store %arg7[%c0_27, %c0_28], %46 {strides = array<i32>} : memref<128x1xf32, #tpu.memory_space<vmem>>, vector<128x1xf32>,
      %cst_29 = arith.constant 0.000000e+00 : f32
      %48 = vector.broadcast %cst_29 : f32 to vector<128x1xf32>
      %c0_30 = arith.constant 0 : index
      %c0_31 = arith.constant 0 : index
      %49 = vector.load %arg8[%c0_30, %c0_31] : memref<128x1xf32, #tpu.memory_space<vmem>>, vector<128x1xf32>
      tpu.vector_store %arg8[%c0_30, %c0_31], %48 {strides = array<i32>} : memref<128x1xf32, #tpu.memory_space<vmem>>, vector<128x1xf32>,
    } else {
    }
    %c0 = arith.constant 0 : index
    %c0_1 = arith.constant 0 : index
    %3 = vector.load %arg2[%c0, %c0_1] : memref<128x128xbf16, #tpu.memory_space<vmem>>, vector<128x128xbf16>
    %c0_2 = arith.constant 0 : index
    %c0_3 = arith.constant 0 : index
    %4 = vector.load %arg3[%c0_2, %c0_3] : memref<128x128xbf16, #tpu.memory_space<vmem>>, vector<128x128xbf16>
    %cst = arith.constant dense<0.000000e+00> : vector<128x128xf32>
    %5 = tpu.matmul %3, %4, %cst {dimension_numbers = #tpu.dot_dimension_numbers<[1], [1], [0], [0], [0, 0, 1, 0], [], []>} : vector<128x128xbf16>, vector<128x128xbf16>, vector<128x128xf32> -> vector<128x128xf32>
    %6 = tpu.iota {dimensions = array<i32: 1>} : vector<1x128xi32>
    %c128_i32 = arith.constant 128 : i32
    %7 = arith.muli %arg1, %c128_i32 : i32
    %8 = vector.broadcast %7 : i32 to vector<1x128xi32>
    %9 = arith.addi %6, %8 : vector<1x128xi32>
    %c16_i32 = arith.constant 16 : i32
    %10 = vector.broadcast %c16_i32 : i32 to vector<1x128xi32>
    %11 = arith.cmpi slt, %9, %10 : vector<1x128xi32>
    %cst_4 = arith.constant -1.000000e+30 : f32
    %12 = vector.shape_cast %11 : vector<1x128xi1> to vector<1x128xi1>
    %13 = vector.broadcast %12 : vector<1x128xi1> to vector<128x128xi1>
    %14 = vector.broadcast %cst_4 : f32 to vector<128x128xf32>
    %15 = arith.select %13, %5, %14 : vector<128x128xi1>, vector<128x128xf32>
    %c0_5 = arith.constant 0 : index
    %c0_6 = arith.constant 0 : index
    %16 = vector.load %arg6[%c0_5, %c0_6] : memref<128x1xf32, #tpu.memory_space<vmem>>, vector<128x1xf32>
    %cst_7 = arith.constant dense<0xFF800000> : vector<128xf32>
    %17 = vector.multi_reduction <maximumf>, %15, %cst_7 [1] : vector<128x128xf32> to vector<128xf32>
    %18 = vector.shape_cast %17 : vector<128xf32> to vector<128x1xf32>
    %19 = arith.maximumf %16, %18 : vector<128x1xf32>
    %20 = arith.subf %16, %19 : vector<128x1xf32>
    %21 = math.exp %20 : vector<128x1xf32>
    %c0_8 = arith.constant 0 : index
    %c0_9 = arith.constant 0 : index
    %22 = vector.load %arg7[%c0_8, %c0_9] : memref<128x1xf32, #tpu.memory_space<vmem>>, vector<128x1xf32>
    %23 = arith.mulf %21, %22 : vector<128x1xf32>
    %24 = vector.broadcast %19 : vector<128x1xf32> to vector<128x128xf32>
    %25 = arith.subf %15, %24 : vector<128x128xf32>
    %26 = math.exp %25 : vector<128x128xf32>
    %cst_10 = arith.constant dense<0.000000e+00> : vector<128xf32>
    %27 = vector.multi_reduction <add>, %26, %cst_10 [1] : vector<128x128xf32> to vector<128xf32>
    %28 = vector.shape_cast %27 : vector<128xf32> to vector<128x1xf32>
    %29 = arith.addf %23, %28 : vector<128x1xf32>
    %c0_11 = arith.constant 0 : index
    %c0_12 = arith.constant 0 : index
    %30 = vector.load %arg8[%c0_11, %c0_12] : memref<128x1xf32, #tpu.memory_space<vmem>>, vector<128x1xf32>
    %cst_13 = arith.constant 0.000000e+00 : f32
    %31 = vector.shape_cast %11 : vector<1x128xi1> to vector<1x128xi1>
    %32 = vector.broadcast %31 : vector<1x128xi1> to vector<128x128xi1>
    %33 = vector.broadcast %cst_13 : f32 to vector<128x128xf32>
    %34 = arith.select %32, %5, %33 : vector<128x128xi1>, vector<128x128xf32>
    %cst_14 = arith.constant dense<0.000000e+00> : vector<128xf32>
    %35 = vector.multi_reduction <add>, %34, %cst_14 [1] : vector<128x128xf32> to vector<128xf32>
    %36 = vector.shape_cast %35 : vector<128xf32> to vector<128x1xf32>
    %37 = arith.addf %30, %36 : vector<128x1xf32>
    %c0_15 = arith.constant 0 : index
    %c0_16 = arith.constant 0 : index
    %38 = vector.load %arg6[%c0_15, %c0_16] : memref<128x1xf32, #tpu.memory_space<vmem>>, vector<128x1xf32>
    tpu.vector_store %arg6[%c0_15, %c0_16], %19 {strides = array<i32>} : memref<128x1xf32, #tpu.memory_space<vmem>>, vector<128x1xf32>,
    %c0_17 = arith.constant 0 : index
    %c0_18 = arith.constant 0 : index
    %39 = vector.load %arg7[%c0_17, %c0_18] : memref<128x1xf32, #tpu.memory_space<vmem>>, vector<128x1xf32>
    tpu.vector_store %arg7[%c0_17, %c0_18], %29 {strides = array<i32>} : memref<128x1xf32, #tpu.memory_space<vmem>>, vector<128x1xf32>,
    %c0_19 = arith.constant 0 : index
    %c0_20 = arith.constant 0 : index
    %40 = vector.load %arg8[%c0_19, %c0_20] : memref<128x1xf32, #tpu.memory_space<vmem>>, vector<128x1xf32>
    tpu.vector_store %arg8[%c0_19, %c0_20], %37 {strides = array<i32>} : memref<128x1xf32, #tpu.memory_space<vmem>>, vector<128x1xf32>,
    %c0_i32_21 = arith.constant 0 : i32
    %41 = arith.cmpi eq, %arg1, %c0_i32_21 : i32
    %42 = arith.extui %41 : i1 to i32
    %c0_i32_22 = arith.constant 0 : i32
    %43 = arith.cmpi ne, %42, %c0_i32_22 : i32
    scf.if %43 {
      %c0_23 = arith.constant 0 : index
      %c0_24 = arith.constant 0 : index
      %44 = vector.load %arg4[%c0_23, %c0_24] : memref<128x128xbf16, #tpu.memory_space<vmem>>, vector<128x128xbf16>
      %cst_25 = arith.constant dense<0.000000e+00> : vector<128x128xf32>
      %45 = tpu.matmul %3, %44, %cst_25 {dimension_numbers = #tpu.dot_dimension_numbers<[1], [1], [0], [0], [0, 0, 1, 0], [], []>} : vector<128x128xbf16>, vector<128x128xbf16>, vector<128x128xf32> -> vector<128x128xf32>
      %46 = tpu.iota {dimensions = array<i32: 1>} : vector<1x128xi32>
      %c2_i32 = arith.constant 2 : i32
      %47 = vector.broadcast %c2_i32 : i32 to vector<1x128xi32>
      %48 = arith.cmpi slt, %46, %47 : vector<1x128xi32>
      %cst_26 = arith.constant -1.000000e+30 : f32
      %49 = vector.shape_cast %48 : vector<1x128xi1> to vector<1x128xi1>
      %50 = vector.broadcast %49 : vector<1x128xi1> to vector<128x128xi1>
      %51 = vector.broadcast %cst_26 : f32 to vector<128x128xf32>
      %52 = arith.select %50, %45, %51 : vector<128x128xi1>, vector<128x128xf32>
      %53 = vector.broadcast %19 : vector<128x1xf32> to vector<128x128xf32>
      %54 = arith.subf %52, %53 : vector<128x128xf32>
      %55 = math.exp %54 : vector<128x128xf32>
      %cst_27 = arith.constant dense<0.000000e+00> : vector<128xf32>
      %56 = vector.multi_reduction <add>, %55, %cst_27 [1] : vector<128x128xf32> to vector<128xf32>
      %57 = vector.shape_cast %56 : vector<128xf32> to vector<128x1xf32>
      %cst_28 = arith.constant 8.000000e+00 : f32
      %58 = vector.broadcast %cst_28 : f32 to vector<128x1xf32>
      %59 = arith.mulf %58, %57 : vector<128x1xf32>
      %60 = arith.addf %29, %59 : vector<128x1xf32>
      %cst_29 = arith.constant 9.99999993E-9 : f32
      %61 = vector.broadcast %cst_29 : f32 to vector<128x1xf32>
      %62 = arith.addf %60, %61 : vector<128x1xf32>
      %63 = math.log %62 : vector<128x1xf32>
      %64 = arith.addf %19, %63 : vector<128x1xf32>
      %cst_30 = arith.constant 1.600000e+01 : f32
      %65 = vector.broadcast %cst_30 : f32 to vector<128x1xf32>
      %66 = arith.mulf %65, %64 : vector<128x1xf32>
      %67 = arith.subf %37, %66 : vector<128x1xf32>
      %68 = tpu.iota {dimensions = array<i32: 0>} : vector<128x1xi32>
      %c128_i32_31 = arith.constant 128 : i32
      %69 = arith.muli %arg0, %c128_i32_31 : i32
      %70 = vector.broadcast %69 : i32 to vector<128x1xi32>
      %71 = arith.addi %68, %70 : vector<128x1xi32>
      %c16_i32_32 = arith.constant 16 : i32
      %72 = vector.broadcast %c16_i32_32 : i32 to vector<128x1xi32>
      %73 = arith.cmpi slt, %71, %72 : vector<128x1xi32>
      %cst_33 = arith.constant 0.000000e+00 : f32
      %74 = vector.broadcast %cst_33 : f32 to vector<128x1xf32>
      %75 = arith.select %73, %67, %74 : vector<128x1xi1>, vector<128x1xf32>
      %cst_34 = arith.constant dense<0.000000e+00> : vector<1xf32>
      %76 = vector.multi_reduction <add>, %75, %cst_34 [0] : vector<128x1xf32> to vector<1xf32>
      %77 = vector.shape_cast %76 : vector<1xf32> to vector<1x1xf32>
      %78 = vector.shape_cast %77 : vector<1x1xf32> to vector<1x1xf32>
      %79 = vector.broadcast %78 : vector<1x1xf32> to vector<1x128xf32>
      %c0_35 = arith.constant 0 : index
      %c0_36 = arith.constant 0 : index
      %80 = vector.load %arg5[%c0_35, %c0_36] : memref<1x128xf32, #tpu.memory_space<vmem>>, vector<1x128xf32>
      tpu.vector_store %arg5[%c0_35, %c0_36], %79 {strides = array<i32>} : memref<1x128xf32, #tpu.memory_space<vmem>>, vector<1x128xf32>,
    } else {
    }
    return
  }
  func.func @transform_0(%arg0: i32, %arg1: i32) -> (i32, i32) {
    %c0_i32 = arith.constant 0 : i32
    %c0_i32_0 = arith.constant 0 : i32
    return %arg0, %c0_i32 : i32, i32
  }
  func.func @transform_1(%arg0: i32, %arg1: i32) -> (i32, i32) {
    %c0_i32 = arith.constant 0 : i32
    %c0_i32_0 = arith.constant 0 : i32
    return %c0_i32, %arg1 : i32, i32
  }
  func.func @transform_2(%arg0: i32, %arg1: i32) -> (i32, i32) {
    %c0_i32 = arith.constant 0 : i32
    %c0_i32_0 = arith.constant 0 : i32
    %c0_i32_1 = arith.constant 0 : i32
    return %c0_i32, %c0_i32_0 : i32, i32
  }
  func.func @transform_3(%arg0: i32, %arg1: i32) -> (i32, i32) {
    %c0_i32 = arith.constant 0 : i32
    %c0_i32_0 = arith.constant 0 : i32
    return %arg0, %c0_i32 : i32, i32
  }
}

</mosaic_0001>

<bundles_post_ra>
// kernel: tpu_custom_call.1
= control target key start
LH: loop header
LB: loop body
LE: loop exit
PB: predicated region body
PF: predicated region fallthrough
CT: control target
= control target key end

     0   :  { %8 = vsyncpa [#allocation6], 0  ;;  %s2222_s0 = inlined_call_operand.hbm [shape: bf16[128,128], index: 0, kind: input, shape index: {}]   ;;  %s2223_s1 = inlined_call_operand.hbm [shape: bf16[128,128], index: 1, kind: input, shape index: {}]   ;;  %s2224_s2 = inlined_call_operand.hbm [shape: bf16[128,128], index: 2, kind: input, shape index: {}]   ;;  %s2225_s3 = inlined_call_operand.hbm [shape: f32[1,128], index: 3, kind: output, shape index: {}]  }
   0x1   :  { %9 = vsyncpa [#allocation9], 0 }
   0x2   :  { %10 = vsyncpa [#allocation7], 0  ;;  %s1646_s12 = smov [#allocation8]   ;;  %s1647_s14 = smov [#allocation5]  }
   0x3   :  { %s28_s13 = sshll.u32 %s1646_s12, 4  ;;  %s16_s15 = sshll.u32 %s1647_s14, 4  ;;  %s29_s13 = int_to_ptr.vmem [resolvable:$true] %s28_s13  ;;  %s1675_s15 = int_to_ptr.vmem [resolvable:$true] %s16_s15 }
   0x4   :  { %s1552_s18 = scalar_lea.hbm %s2223_s1, 1024 }
   0x5   :  { %p1553_p0 = scmp.ne.s32.totalorder %s2223_s1, %s1552_s18  ;;  %p1556_p1 = scmp.lt.u32.totalorder %s1552_s18, %s2223_s1 }
   0x7   :  { %p1558_p2 = pnand %p1556_p1, %p1553_p0 }
   0x9   :  { %1561 = shalt.err (!%p1558_p2)
}
   0xa   :  { %s1562_s23 = scalar_lea.vmem %s29_s13, 1024  ;;  %p1567_p4 = scmp.lt.s32.totalorder %s29_s13, %s29_s13 }
   0xb   :  { %p1563_p3 = scmp.ne.s32.totalorder %s29_s13, %s1562_s23  ;;  %p1568_p5 = scmp.lt.s32.totalorder %s1562_s23, %s1562_s23 }
   0xd   :  { %p1569_p6 = por %p1568_p5, %p1567_p4 }
   0xf   :  { %p1570_p7 = pnand %p1569_p6, %p1563_p3 }
  0x11   :  { %1573 = shalt.err (!%p1570_p7)
}
  0x12   :  { %s1648_s24 = smov 64   ;;  %s1649_s25 = smov 4  }
  0x13   :  { %34 = dma.hbm_to_vmem [thread:$0]  %s2223_s1, 1024, %s29_s13, [#allocation9], %s1648_s24, %s1648_s24, %s1649_s25  }
  0x14   :  { %s1574_s30 = scalar_lea.hbm %s2222_s0, 1024 }
  0x15   :  { %p1575_p8 = scmp.ne.s32.totalorder %s2222_s0, %s1574_s30  ;;  %p1578_p9 = scmp.lt.u32.totalorder %s1574_s30, %s2222_s0 }
  0x17   :  { %p1580_p10 = pnand %p1578_p9, %p1575_p8 }
  0x19   :  { %1583 = shalt.err (!%p1580_p10)
}
  0x1a   :  { %s1584_s8 = scalar_lea.vmem %s1675_s15, 1024  ;;  %p1589_p12 = scmp.lt.s32.totalorder %s1675_s15, %s1675_s15 }
  0x1b   :  { %p1585_p11 = scmp.ne.s32.totalorder %s1675_s15, %s1584_s8  ;;  %p1590_p13 = scmp.lt.s32.totalorder %s1584_s8, %s1584_s8 }
  0x1d   :  { %p1591_p0 = por %p1590_p13, %p1589_p12 }
  0x1f   :  { %p1592_p1 = pnand %p1591_p0, %p1585_p11 }
  0x21   :  { %1595 = shalt.err (!%p1592_p1)
}
  0x22   :  { %22 = dma.hbm_to_vmem [thread:$0]  %s2222_s0, 1024, %s1675_s15, [#allocation6], %s1648_s24, %s1648_s24, %s1649_s25  }
  0x23   :  { %s1650_s10 = smov [#allocation10]   ;;  %s1596_s14 = scalar_lea.hbm %s2224_s2, 1024 }
  0x24   :  { %s40_s11 = sshll.u32 %s1650_s10, 4  ;;  %p1597_p2 = scmp.ne.s32.totalorder %s2224_s2, %s1596_s14  ;;  %s41_s11 = int_to_ptr.vmem [resolvable:$true] %s40_s11 }
  0x25   :  { %p1600_p3 = scmp.lt.u32.totalorder %s1596_s14, %s2224_s2 }
  0x27   :  { %p1602_p4 = pnand %p1600_p3, %p1597_p2 }
  0x29   :  { %1605 = shalt.err (!%p1602_p4)
}
  0x2a   :  { %s1606_s20 = scalar_lea.vmem %s41_s11, 1024  ;;  %p1611_p6 = scmp.lt.s32.totalorder %s41_s11, %s41_s11 }
  0x2b   :  { %p1607_p5 = scmp.ne.s32.totalorder %s41_s11, %s1606_s20  ;;  %p1612_p7 = scmp.lt.s32.totalorder %s1606_s20, %s1606_s20 }
  0x2d   :  { %p1613_p8 = por %p1612_p7, %p1611_p6 }
  0x2f   :  { %p1614_p9 = pnand %p1613_p8, %p1607_p5 }
  0x31   :  { %1617 = shalt.err (!%p1614_p9)
}
  0x32   :  { %46 = dma.hbm_to_vmem [thread:$0]  %s2224_s2, 1024, %s41_s11, [#allocation9], %s1648_s24, %s1648_s24, %s1649_s25  }
  0x33   :  { %1640 = dma.done.wait [#allocation6], 1024  }
  0x34   :  { %1641 = vsyncadd [#allocation6], 4294966272 }
  0x35   :  { %1642 = dma.done.wait [#allocation9], 2048  }
  0x36   :  { %1643 = vsyncadd [#allocation9], 4294965248  ;;  %v1456_v0 = vld [vmem:[#allocation8] sm:$0xff]   ;;  %v1457_v1 = vld [vmem:[#allocation8 + $0x8] sm:$0xff]   ;;  %vm61_vm0 = vcmask 7168   ;;  %v335_v25 = vlaneseq  ;;  %v1652_v52 = vmov 0  }
  0x37   :  { %1381 = vmatprep.subr.bf16.mxu0 %v1456_v0  ;;  %v1458_v2 = vld [vmem:[#allocation8 + $0x10] sm:$0xff]   ;;  %v1464_v3 = vld [vmem:[#allocation5] sm:$0xff]   ;;  %v1459_v4 = vld [vmem:[#allocation8 + $0x18] sm:$0xff]   ;;  %v1651_v24 = vmov -1e+30   ;;  %1454 = vset.pattern.permute.xlu1 %v1652_v52  ;;  %v1653_v58 = vmov 0.0  }
  0x38   :  { %1382 = vmatpush3.bf16.xpose.msra.mxu0 %v1456_v0  ;;  %1397 = vmatprep.mubr.bf16.mxu0 %v1464_v3  ;;  %v1472_v5 = vld [vmem:[#allocation10] sm:$0xff]   ;;  %v1461_v7 = vld [vmem:[#allocation8 + $0x28] sm:$0xff]   ;;  %v1462_v8 = vld [vmem:[#allocation8 + $0x30] sm:$0xff]   ;;  %62 = vst.msk [vmem:[#allocation2] sm:$0xff] %vm61_vm0, %v1651_v24  ;;  %v1743_v26 = vand.u32 127, %v335_v25  ;;  %s1654_s2 = smov [#allocation11]  }
  0x39   :  { %1383 = vmatprep.subr.bf16.mxu0 %v1457_v1  ;;  %1429 = vmatprep.mubr.bf16.mxu1 %v1464_v3  ;;  %v1460_v6 = vld [vmem:[#allocation8 + $0x20] sm:$0xff]   ;;  %v1463_v9 = vld [vmem:[#allocation8 + $0x38] sm:$0xff]   ;;  %v1465_v10 = vld [vmem:[#allocation5 + $0x8] sm:$0xff]   ;;  %63 = vst.msk [vmem:[#allocation2 + $0x8] sm:$0xff] %vm61_vm0, %v1651_v24  ;;  %s1315_s21 = sshll.u32 %s1654_s2, 4  ;;  %s1316_s21 = int_to_ptr.vmem [resolvable:$true] %s1315_s21 }
  0x3a   :  { %1413 = vmatprep.subr.bf16.mxu1 %v1472_v5  ;;  %v1466_v11 = vld [vmem:[#allocation5 + $0x10] sm:$0xff]   ;;  %v1467_v12 = vld [vmem:[#allocation5 + $0x18] sm:$0xff]   ;;  %v1468_v13 = vld [vmem:[#allocation5 + $0x20] sm:$0xff]   ;;  %64 = vst.msk [vmem:[#allocation2 + $0x10] sm:$0xff] %vm61_vm0, %v1651_v24  ;;  %vm340_vm1 = vcmp.lt.s32.totalorder %v1743_v26, 16  ;;  %1455 = vset.pattern.permute.xlu0 %v1652_v52  ;;  %vm972_vm2 = vcmp.lt.s32.totalorder %v1743_v26, 2  ;;  %p1623_p11 = scmp.lt.s32.totalorder %s1316_s21, %s1316_s21 }
  0x3b   :  { %1414 = vmatpush3.bf16.xpose.msra.mxu1 %v1472_v5  ;;  %v1469_v14 = vld [vmem:[#allocation5 + $0x28] sm:$0xff]   ;;  %v1470_v15 = vld [vmem:[#allocation5 + $0x30] sm:$0xff]   ;;  %v1471_v16 = vld [vmem:[#allocation5 + $0x38] sm:$0xff]   ;;  %65 = vst.msk [vmem:[#allocation2 + $0x18] sm:$0xff] %vm61_vm0, %v1651_v24  ;;  %s1618_s22 = scalar_lea.vmem %s1316_s21, 16  ;;  %s1622_s23 = scalar_lea.vmem %s1316_s21, 32 }
  0x3c   :  { %v1473_v17 = vld [vmem:[#allocation10 + $0x8] sm:$0xff]   ;;  %v1474_v18 = vld [vmem:[#allocation10 + $0x10] sm:$0xff]   ;;  %v1475_v19 = vld [vmem:[#allocation10 + $0x18] sm:$0xff]   ;;  %66 = vst.msk [vmem:[#allocation2 + $0x20] sm:$0xff] %vm61_vm0, %v1651_v24  ;;  %p1619_p10 = scmp.ne.s32.totalorder %s1316_s21, %s1618_s22  ;;  %p1624_p12 = scmp.lt.s32.totalorder %s1622_s23, %s1618_s22 }
  0x3d   :  { %1415 = vmatprep.subr.bf16.mxu1 %v1473_v17  ;;  %v1476_v20 = vld [vmem:[#allocation10 + $0x20] sm:$0xff]   ;;  %v1477_v21 = vld [vmem:[#allocation10 + $0x28] sm:$0xff]   ;;  %v1478_v22 = vld [vmem:[#allocation10 + $0x30] sm:$0xff]   ;;  %67 = vst.msk [vmem:[#allocation2 + $0x28] sm:$0xff] %vm61_vm0, %v1651_v24 }
  0x3e   :  { %v1479_v23 = vld [vmem:[#allocation10 + $0x38] sm:$0xff]   ;;  %68 = vst.msk [vmem:[#allocation2 + $0x30] sm:$0xff] %vm61_vm0, %v1651_v24  ;;  %69 = vst.msk [vmem:[#allocation2 + $0x38] sm:$0xff] %vm61_vm0, %v1651_v24  ;;  %p1625_p13 = por %p1624_p12, %p1623_p11 }
  0x3f   :  { %70 = vst.msk [vmem:[#allocation2 + $0x40] sm:$0xff] %vm61_vm0, %v1651_v24  ;;  %71 = vst.msk [vmem:[#allocation2 + $0x48] sm:$0xff] %vm61_vm0, %v1651_v24 }
  0x40   :  { %1384 = vmatpush3.bf16.xpose.msra.mxu0 %v1457_v1  ;;  %72 = vst.msk [vmem:[#allocation2 + $0x50] sm:$0xff] %vm61_vm0, %v1651_v24  ;;  %73 = vst.msk [vmem:[#allocation2 + $0x58] sm:$0xff] %vm61_vm0, %v1651_v24  ;;  %p1626_p0 = pnand %p1625_p13, %p1619_p10 }
  0x41   :  { %1385 = vmatprep.subr.bf16.mxu0 %v1458_v2  ;;  %74 = vst.msk [vmem:[#allocation2 + $0x60] sm:$0xff] %vm61_vm0, %v1651_v24  ;;  %75 = vst.msk [vmem:[#allocation2 + $0x68] sm:$0xff] %vm61_vm0, %v1651_v24 }
  0x42   :  { %76 = vst.msk [vmem:[#allocation2 + $0x70] sm:$0xff] %vm61_vm0, %v1651_v24  ;;  %77 = vst.msk [vmem:[#allocation2 + $0x78] sm:$0xff] %vm61_vm0, %v1651_v24 }
  0x43   :  { %1416 = vmatpush3.bf16.xpose.msra.mxu1 %v1473_v17  ;;  %94 = vst.msk [vmem:[#allocation4] sm:$0xff] %vm61_vm0, %v1653_v58  ;;  %78 = vst.msk [vmem:[#allocation3] sm:$0xff] %vm61_vm0, %v1653_v58 }
  0x44   :  { %1417 = vmatprep.subr.bf16.mxu1 %v1474_v18  ;;  %79 = vst.msk [vmem:[#allocation3 + $0x8] sm:$0xff] %vm61_vm0, %v1653_v58  ;;  %80 = vst.msk [vmem:[#allocation3 + $0x10] sm:$0xff] %vm61_vm0, %v1653_v58 }
  0x45   :  { %81 = vst.msk [vmem:[#allocation3 + $0x18] sm:$0xff] %vm61_vm0, %v1653_v58  ;;  %82 = vst.msk [vmem:[#allocation3 + $0x20] sm:$0xff] %vm61_vm0, %v1653_v58  ;;  %v1973_v52 = vld [vmem:[#allocation2 + $0x30] sm:$0xff] }
  0x46   :  { %83 = vst.msk [vmem:[#allocation3 + $0x28] sm:$0xff] %vm61_vm0, %v1653_v58  ;;  %84 = vst.msk [vmem:[#allocation3 + $0x30] sm:$0xff] %vm61_vm0, %v1653_v58 }
  0x47   :  { %85 = vst.msk [vmem:[#allocation3 + $0x38] sm:$0xff] %vm61_vm0, %v1653_v58  ;;  %86 = vst.msk [vmem:[#allocation3 + $0x40] sm:$0xff] %vm61_vm0, %v1653_v58 }
  0x48   :  { %1386 = vmatpush3.bf16.xpose.msra.mxu0 %v1458_v2  ;;  %87 = vst.msk [vmem:[#allocation3 + $0x48] sm:$0xff] %vm61_vm0, %v1653_v58  ;;  %88 = vst.msk [vmem:[#allocation3 + $0x50] sm:$0xff] %vm61_vm0, %v1653_v58 }
  0x49   :  { %1387 = vmatprep.subr.bf16.mxu0 %v1459_v4  ;;  %89 = vst.msk [vmem:[#allocation3 + $0x58] sm:$0xff] %vm61_vm0, %v1653_v58  ;;  %90 = vst.msk [vmem:[#allocation3 + $0x60] sm:$0xff] %vm61_vm0, %v1653_v58 }
  0x4a   :  { %91 = vst.msk [vmem:[#allocation3 + $0x68] sm:$0xff] %vm61_vm0, %v1653_v58  ;;  %92 = vst.msk [vmem:[#allocation3 + $0x70] sm:$0xff] %vm61_vm0, %v1653_v58 }
  0x4b   :  { %1418 = vmatpush3.bf16.xpose.msra.mxu1 %v1474_v18  ;;  %93 = vst.msk [vmem:[#allocation3 + $0x78] sm:$0xff] %vm61_vm0, %v1653_v58  ;;  %95 = vst.msk [vmem:[#allocation4 + $0x8] sm:$0xff] %vm61_vm0, %v1653_v58 }
  0x4c   :  { %1419 = vmatprep.subr.bf16.mxu1 %v1475_v19  ;;  %96 = vst.msk [vmem:[#allocation4 + $0x10] sm:$0xff] %vm61_vm0, %v1653_v58  ;;  %97 = vst.msk [vmem:[#allocation4 + $0x18] sm:$0xff] %vm61_vm0, %v1653_v58 }
  0x4d   :  { %98 = vst.msk [vmem:[#allocation4 + $0x20] sm:$0xff] %vm61_vm0, %v1653_v58  ;;  %99 = vst.msk [vmem:[#allocation4 + $0x28] sm:$0xff] %vm61_vm0, %v1653_v58 }
  0x4e   :  { %100 = vst.msk [vmem:[#allocation4 + $0x30] sm:$0xff] %vm61_vm0, %v1653_v58  ;;  %101 = vst.msk [vmem:[#allocation4 + $0x38] sm:$0xff] %vm61_vm0, %v1653_v58 }
  0x4f   :  { %102 = vst.msk [vmem:[#allocation4 + $0x40] sm:$0xff] %vm61_vm0, %v1653_v58  ;;  %103 = vst.msk [vmem:[#allocation4 + $0x48] sm:$0xff] %vm61_vm0, %v1653_v58 }
  0x50   :  { %1388 = vmatpush3.bf16.xpose.msra.mxu0 %v1459_v4  ;;  %104 = vst.msk [vmem:[#allocation4 + $0x50] sm:$0xff] %vm61_vm0, %v1653_v58  ;;  %105 = vst.msk [vmem:[#allocation4 + $0x58] sm:$0xff] %vm61_vm0, %v1653_v58 }
  0x51   :  { %1389 = vmatprep.subr.bf16.mxu0 %v1460_v6  ;;  %106 = vst.msk [vmem:[#allocation4 + $0x60] sm:$0xff] %vm61_vm0, %v1653_v58  ;;  %107 = vst.msk [vmem:[#allocation4 + $0x68] sm:$0xff] %vm61_vm0, %v1653_v58 }
  0x52   :  { %108 = vst.msk [vmem:[#allocation4 + $0x70] sm:$0xff] %vm61_vm0, %v1653_v58  ;;  %109 = vst.msk [vmem:[#allocation4 + $0x78] sm:$0xff] %vm61_vm0, %v1653_v58 }
  0x53   :  { %1420 = vmatpush3.bf16.xpose.msra.mxu1 %v1475_v19 }
  0x54   :  { %1421 = vmatprep.subr.bf16.mxu1 %v1476_v20 }
  0x58   :  { %1390 = vmatpush3.bf16.xpose.msra.mxu0 %v1460_v6 }
  0x59   :  { %1391 = vmatprep.subr.bf16.mxu0 %v1461_v7 }
  0x5b   :  { %1422 = vmatpush3.bf16.xpose.msra.mxu1 %v1476_v20 }
  0x5c   :  { %1423 = vmatprep.subr.bf16.mxu1 %v1477_v21 }
  0x60   :  { %1392 = vmatpush3.bf16.xpose.msra.mxu0 %v1461_v7 }
  0x61   :  { %1393 = vmatprep.subr.bf16.mxu0 %v1462_v8 }
  0x63   :  { %1424 = vmatpush3.bf16.xpose.msra.mxu1 %v1477_v21  ;;  %v1944_v21 = vld [vmem:[#allocation2 + $0x8] sm:$0xff] }
  0x64   :  { %1425 = vmatprep.subr.bf16.mxu1 %v1478_v22 }
  0x68   :  { %1394 = vmatpush3.bf16.xpose.msra.mxu0 %v1462_v8 }
  0x69   :  { %1395 = vmatprep.subr.bf16.mxu0 %v1463_v9 }
  0x6b   :  { %1426 = vmatpush3.bf16.xpose.msra.mxu1 %v1478_v22 }
  0x6c   :  { %1427 = vmatprep.subr.bf16.mxu1 %v1479_v23 }
  0x70   :  { %1396 = vmatpush3.bf16.xpose.msra.mxu0 %v1463_v9 }
  0x73   :  { %1428 = vmatpush3.bf16.xpose.msra.mxu1 %v1479_v23  ;;  %v2041_v23 = vld [vmem:[#allocation2 + $0x58] sm:$0xff] }
  0x74   :  { %2249 = vst [vmem:[#allocation23_spill] sm:$0xff] %v2041_v23 }
  0x77   :  { %1398 = vmatmul.mubr.bf16.vlgmr.msra.gmra.mrb[0].mxu0 %v1465_v10 }
  0x78   :  { %1401 = vmatprep.mubr.bf16.mxu0 %v1466_v11 }
  0x7a   :  { %1430 = vmatmul.mubr.bf16.vlgmr.msra.gmra.mrb[0].mxu1 %v1465_v10 }
  0x7b   :  { %1433 = vmatprep.mubr.bf16.mxu1 %v1466_v11 }
  0x7f   :  { %1402 = vmatmul.mubr.bf16.gmra.mrb[4].mxu0 %v1467_v12 }
  0x80   :  { %1405 = vmatprep.mubr.bf16.mxu0 %v1468_v13 }
  0x82   :  { %1434 = vmatmul.mubr.bf16.gmra.mrb[4].mxu1 %v1467_v12 }
  0x83   :  { %1437 = vmatprep.mubr.bf16.mxu1 %v1468_v13  ;;  %v1932_v13 = vld [vmem:[#allocation2] sm:$0xff] }
  0x87   :  { %1406 = vmatmul.mubr.bf16.gmra.mrb[8].mxu0 %v1469_v14 }
  0x88   :  { %1409 = vmatprep.mubr.bf16.mxu0 %v1470_v15 }
  0x8a   :  { %1438 = vmatmul.mubr.bf16.gmra.mrb[8].mxu1 %v1469_v14  ;;  %v1934_v14 = vld [vmem:[#allocation2 + $0x18] sm:$0xff] }
  0x8b   :  { %1441 = vmatprep.mubr.bf16.mxu1 %v1470_v15 }
  0x8f   :  { %1410 = vmatmul.mubr.bf16.gmra.mrb[12].mxu0 %v1471_v16 }
  0x92   :  { %1442 = vmatmul.mubr.bf16.gmra.mrb[12].mxu1 %v1471_v16 }
 0x14a   :  { %v1399_v27 = vpop.f32.mrb[0].mxu0 }
 0x14b   :  { %v272_v28 = vpop.f32.mrb[1].mxu0  ;;  %v1748_v29 = vsel %vm340_vm1, %v1399_v27, 0.0  ;;  %v1779_v40 = vsel %vm340_vm1, %v1399_v27, -1e+30  ;;  %v1956_v27 = vld [vmem:[#allocation2 + $0x10] sm:$0xff] }
 0x14c   :  { %v1400_v30 = vpop.f32.mrb[2].mxu0  ;;  %v1752_v31 = vsel %vm340_vm1, %v272_v28, -1e+30  ;;  %v695_v46 = vsel %vm340_vm1, %v272_v28, 0.0 }
 0x14d   :  { %375 = vmax.xlane.f32.xlu0 %v1752_v31  ;;  %v275_v32 = vpop.f32.mrb[3].mxu0  ;;  %v1757_v33 = vsel %vm340_vm1, %v1400_v30, -1e+30  ;;  %v1761_v34 = vsel %vm340_vm1, %v1400_v30, 0.0  ;;  %v1431_v16 = vpop.f32.mrb[0].mxu1 }
 0x14e   :  { %381 = vmax.xlane.f32.xlu1 %v1757_v33  ;;  %v1766_v35 = vsel %vm340_vm1, %v275_v32, 0.0  ;;  %v1770_v36 = vsel %vm340_vm1, %v275_v32, -1e+30  ;;  %v1939_v19 = vpop.f32.mrb[1].mxu1 }
 0x14f   :  { %v1432_v22 = vpop.f32.mrb[2].mxu1 }
 0x150   :  { %v1958_v28 = vpop.f32.mrb[3].mxu1 }
 0x151   :  { %377 = vmax.xlane.f32.xlu0 %v1770_v36 }
 0x152   :  { %v1403_v37 = vpop.f32.mrb[4].mxu0 }
 0x153   :  { %v288_v38 = vpop.f32.mrb[5].mxu0  ;;  %v1775_v39 = vsel %vm340_vm1, %v1403_v37, 0.0  ;;  %v1801_v47 = vsel %vm340_vm1, %v1403_v37, -1e+30 }
 0x154   :  { %v1404_v41 = vpop.f32.mrb[6].mxu0  ;;  %v1783_v42 = vsel %vm340_vm1, %v288_v38, 0.0  ;;  %v1824_v56 = vsel %vm340_vm1, %v288_v38, -1e+30 }
 0x155   :  { %379 = vmax.xlane.f32.xlu0 %v1779_v40  ;;  %v1786_v43 = vpop.f32.mrb[7].mxu0  ;;  %v1790_v44 = vsel %vm340_vm1, %v1404_v41, 0.0  ;;  %v1865_v59 = vsel %vm340_vm1, %v1404_v41, -1e+30  ;;  %v1435_v32 = vpop.f32.mrb[4].mxu1  ;;  %v679_v41 = vld [vmem:[#allocation4] sm:$0xff] }
 0x156   :  { %v1795_v45 = vsel %vm340_vm1, %v1786_v43, 0.0  ;;  %v1887_v4 = vsel %vm340_vm1, %v1786_v43, -1e+30  ;;  %v925_v38 = vpop.f32.mrb[5].mxu1  ;;  %v1995_v32 = vld [vmem:[#allocation2 + $0x78] sm:$0xff] }
 0x157   :  { %v1436_v43 = vpop.f32.mrb[6].mxu1  ;;  %2242 = vst [vmem:[#allocation16_spill] sm:$0xff] %v1995_v32 }
 0x159   :  { %711 = vadd.xlane.f32.xlu0 %v695_v46 }
 0x15a   :  { %v1407_v48 = vpop.f32.mrb[8].mxu0 }
 0x15b   :  { %v1803_v49 = vpop.f32.mrb[9].mxu0  ;;  %v1807_v50 = vsel %vm340_vm1, %v1407_v48, 0.0  ;;  %v1901_v7 = vsel %vm340_vm1, %v1407_v48, -1e+30  ;;  %v928_v48 = vpop.f32.mrb[7].mxu1 }
 0x15c   :  { %v1809_v51 = vpop.f32.mrb[10].mxu0  ;;  %v1814_v53 = vsel %vm340_vm1, %v1803_v49, 0.0  ;;  %v1908_v8 = vsel %vm340_vm1, %v1803_v49, -1e+30 }
 0x15d   :  { %387 = vmax.xlane.f32.xlu0 %v1801_v47  ;;  %v307_v54 = vpop.f32.mrb[11].mxu0  ;;  %v1820_v55 = vsel %vm340_vm1, %v1809_v51, 0.0  ;;  %v1914_v9 = vsel %vm340_vm1, %v1809_v51, -1e+30  ;;  %v1439_v58 = vpop.f32.mrb[8].mxu1 }
 0x15e   :  { %v1828_v57 = vsel %vm340_vm1, %v307_v54, 0.0  ;;  %v1919_v10 = vsel %vm340_vm1, %v307_v54, -1e+30 }
 0x161   :  { %383 = vmax.xlane.f32.xlu0 %v1824_v56 }
 0x162   :  { %v1411_v60 = vpop.f32.mrb[12].mxu0 }
 0x163   :  { %v320_v61 = vpop.f32.mrb[13].mxu0  ;;  %v1869_v62 = vsel %vm340_vm1, %v1411_v60, 0.0  ;;  %v1924_v11 = vsel %vm340_vm1, %v1411_v60, -1e+30 }
 0x164   :  { %v1412_v63 = vpop.f32.mrb[14].mxu0  ;;  %v1873_v0 = vsel %vm340_vm1, %v320_v61, 0.0  ;;  %v1929_v12 = vsel %vm340_vm1, %v320_v61, -1e+30  ;;  %v941_v61 = vpop.f32.mrb[9].mxu1 }
 0x165   :  { %389 = vmax.xlane.f32.xlu0 %v1865_v59  ;;  %v1878_v1 = vsel %vm340_vm1, %v1412_v63, -1e+30  ;;  %v323_v2 = vpop.f32.mrb[15].mxu0  ;;  %v1882_v3 = vsel %vm340_vm1, %v1412_v63, 0.0  ;;  %v1980_v63 = vld [vmem:[#allocation2 + $0x20] sm:$0xff] }
 0x166   :  { %405 = vmax.xlane.f32.xlu1 %v1878_v1  ;;  %v1892_v5 = vsel %vm340_vm1, %v323_v2, 0.0  ;;  %v1896_v6 = vsel %vm340_vm1, %v323_v2, -1e+30  ;;  %v1440_v2 = vpop.f32.mrb[10].mxu1 }
 0x167   :  { %v944_v16 = vpop.f32.mrb[11].mxu1  ;;  %v2032_v2 = vld [vmem:[#allocation2 + $0x40] sm:$0xff] }
 0x168   :  { %v2009_v16 = vld [vmem:[#allocation2 + $0x68] sm:$0xff]  ;;  %2247 = vst [vmem:[#allocation21_spill] sm:$0xff] %v2032_v2 }
 0x169   :  { %385 = vmax.xlane.f32.xlu0 %v1887_v4  ;;  %2243 = vst [vmem:[#allocation17_spill] sm:$0xff] %v2009_v16 }
 0x16a   :  { %401 = vmax.xlane.f32.xlu1 %v1896_v6 }
 0x16d   :  { %395 = vmax.xlane.f32.xlu0 %v1901_v7 }
 0x171   :  { %391 = vmax.xlane.f32.xlu0 %v1908_v8 }
 0x175   :  { %397 = vmax.xlane.f32.xlu0 %v1914_v9 }
 0x179   :  { %393 = vmax.xlane.f32.xlu0 %v1919_v10 }
 0x17d   :  { %403 = vmax.xlane.f32.xlu0 %v1924_v11 }
 0x181   :  { %399 = vmax.xlane.f32.xlu0 %v1929_v12 }
 0x1da   :  { %v376_v15 = vpop.xlane.xlu0 %375 }
 0x1db   :  { %v1937_v17 = vmax.f32 %v1932_v13, %v376_v15  ;;  %v382_v18 = vpop.xlane.xlu1 %381 }
 0x1dc   :  { %v1942_v20 = vmax.f32 %v1934_v14, %v382_v18 }
 0x1dd   :  { %760 = vst.msk [vmem:[#allocation2] sm:$0xff] %vm61_vm0, %v1937_v17  ;;  %505 = vperm.xlu1 %1454, %v1937_v17  }
 0x1de   :  { %763 = vst.msk [vmem:[#allocation2 + $0x18] sm:$0xff] %vm61_vm0, %v1942_v20  ;;  %v378_v24 = vpop.xlane.xlu0 %377 }
 0x1df   :  { %v1954_v25 = vmax.f32 %v1944_v21, %v378_v24  ;;  %v1989_v24 = vld [vmem:[#allocation2 + $0x38] sm:$0xff] }
 0x1e1   :  { %761 = vst.msk [vmem:[#allocation2 + $0x8] sm:$0xff] %vm61_vm0, %v1954_v25  ;;  %510 = vperm.xlu1 %1454, %v1954_v25  }
 0x1e2   :  { %v380_v30 = vpop.xlane.xlu0 %379 }
 0x1e3   :  { %v1964_v37 = vmax.f32 %v1956_v27, %v380_v30 }
 0x1e5   :  { %762 = vst.msk [vmem:[#allocation2 + $0x10] sm:$0xff] %vm61_vm0, %v1964_v37  ;;  %515 = vperm.xlu0 %1455, %v1964_v37  }
 0x1e6   :  { %v712_v49 = vpop.xlane.xlu0 %711 }
 0x1e7   :  { %v1971_v51 = vadd.f32 %v712_v49, %v679_v41  ;;  %v1443_v41 = vpop.f32.mrb[12].mxu1 }
 0x1e8   :  { %v957_v49 = vpop.f32.mrb[13].mxu1 }
 0x1e9   :  { %792 = vst.msk [vmem:[#allocation4] sm:$0xff] %vm61_vm0, %v1971_v51  ;;  %v1444_v61 = vpop.f32.mrb[14].mxu1 }
 0x1ea   :  { %v388_v54 = vpop.xlane.xlu0 %387 }
 0x1eb   :  { %v1978_v60 = vmax.f32 %v1973_v52, %v388_v54  ;;  %v2000_v54 = vld [vmem:[#allocation2 + $0x28] sm:$0xff] }
 0x1ed   :  { %766 = vst.msk [vmem:[#allocation2 + $0x30] sm:$0xff] %vm61_vm0, %v1978_v60 }
 0x1ee   :  { %v384_v18 = vpop.xlane.xlu0 %383 }
 0x1ef   :  { %v1987_v22 = vmax.f32 %v1980_v63, %v384_v18  ;;  %v960_v18 = vpop.f32.mrb[15].mxu1 }
 0x1f1   :  { %2241 = vst [vmem:[#allocation15_spill] sm:$0xff] %v1987_v22  ;;  %764 = vst.msk [vmem:[#allocation2 + $0x20] sm:$0xff] %vm61_vm0, %v1987_v22 }
 0x1f2   :  { %v390_v38 = vpop.xlane.xlu0 %389 }
 0x1f3   :  { %v1998_v43 = vmax.f32 %v1989_v24, %v390_v38  ;;  %v406_v48 = vpop.xlane.xlu1 %405 }
 0x1f4   :  { %v2003_v58 = vmax.f32 %v1995_v32, %v406_v48  ;;  %v2016_v48 = vld [vmem:[#allocation2 + $0x50] sm:$0xff] }
 0x1f5   :  { %767 = vst.msk [vmem:[#allocation2 + $0x38] sm:$0xff] %vm61_vm0, %v1998_v43  ;;  %2244 = vst [vmem:[#allocation18_spill] sm:$0xff] %v2016_v48 }
 0x1f6   :  { %v386_v41 = vpop.xlane.xlu0 %385  ;;  %775 = vst.msk [vmem:[#allocation2 + $0x78] sm:$0xff] %vm61_vm0, %v2003_v58 }
 0x1f7   :  { %v2014_v38 = vmax.f32 %v2000_v54, %v386_v41  ;;  %v402_v49 = vpop.xlane.xlu1 %401 }
 0x1f8   :  { %v2019_v61 = vmax.f32 %v2009_v16, %v402_v49  ;;  %v2050_v49 = vld [vmem:[#allocation2 + $0x48] sm:$0xff] }
 0x1f9   :  { %765 = vst.msk [vmem:[#allocation2 + $0x28] sm:$0xff] %vm61_vm0, %v2014_v38  ;;  %2251 = vst [vmem:[#allocation25_spill] sm:$0xff] %v2050_v49 }
 0x1fa   :  { %2245 = vst [vmem:[#allocation19_spill] sm:$0xff] %v2019_v61  ;;  %v396_v18 = vpop.xlane.xlu0 %395  ;;  %773 = vst.msk [vmem:[#allocation2 + $0x68] sm:$0xff] %vm61_vm0, %v2019_v61 }
 0x1fb   :  { %v2030_v41 = vmax.f32 %v2016_v48, %v396_v18 }
 0x1fd   :  { %2246 = vst [vmem:[#allocation20_spill] sm:$0xff] %v2030_v41  ;;  %770 = vst.msk [vmem:[#allocation2 + $0x50] sm:$0xff] %vm61_vm0, %v2030_v41 }
 0x1fe   :  { %v392_v30 = vpop.xlane.xlu0 %391 }
 0x1ff   :  { %v2039_v46 = vmax.f32 %v2032_v2, %v392_v30  ;;  %v2061_v2 = vld [vmem:[#allocation2 + $0x70] sm:$0xff] }
 0x200   :  { %2253 = vst [vmem:[#allocation27_spill] sm:$0xff] %v2061_v2 }
 0x201   :  { %2248 = vst [vmem:[#allocation22_spill] sm:$0xff] %v2039_v46  ;;  %768 = vst.msk [vmem:[#allocation2 + $0x40] sm:$0xff] %vm61_vm0, %v2039_v46 }
 0x202   :  { %v398_v18 = vpop.xlane.xlu0 %397 }
 0x203   :  { %v2048_v16 = vmax.f32 %v2041_v23, %v398_v18 }
 0x205   :  { %2250 = vst [vmem:[#allocation24_spill] sm:$0xff] %v2048_v16  ;;  %771 = vst.msk [vmem:[#allocation2 + $0x58] sm:$0xff] %vm61_vm0, %v2048_v16  ;;  %560 = vperm.xlu0 %1455, %v2048_v16   ;;  %713 = vadd.xlane.f32.xlu1 %v1766_v35  ;;  %v2071_v16 = vld [vmem:[#allocation2 + $0x60] sm:$0xff] }
 0x206   :  { %v394_v30 = vpop.xlane.xlu0 %393  ;;  %2254 = vst [vmem:[#allocation28_spill] sm:$0xff] %v2071_v16 }
 0x207   :  { %v2059_v15 = vmax.f32 %v2050_v49, %v394_v30 }
 0x209   :  { %2252 = vst [vmem:[#allocation26_spill] sm:$0xff] %v2059_v15  ;;  %570 = vperm.xlu0 %1455, %v2019_v61   ;;  %769 = vst.msk [vmem:[#allocation2 + $0x48] sm:$0xff] %vm61_vm0, %v2059_v15 }
 0x20a   :  { %v404_v32 = vpop.xlane.xlu0 %403 }
 0x20b   :  { %v2069_v48 = vmax.f32 %v2061_v2, %v404_v32  ;;  %v975_v32 = vsel %vm972_vm2, %v1939_v19, -1e+30 }
 0x20d   :  { %774 = vst.msk [vmem:[#allocation2 + $0x70] sm:$0xff] %vm61_vm0, %v2069_v48 }
 0x20e   :  { %v400_v35 = vpop.xlane.xlu0 %399 }
 0x20f   :  { %v2076_v30 = vmax.f32 %v2071_v16, %v400_v35  ;;  %v976_v16 = vsel %vm972_vm2, %v1958_v28, -1e+30  ;;  %v680_v28 = vld [vmem:[#allocation4 + $0x8] sm:$0xff] }
 0x211   :  { %2255 = vst [vmem:[#allocation29_spill] sm:$0xff] %v2076_v30  ;;  %772 = vst.msk [vmem:[#allocation2 + $0x60] sm:$0xff] %vm61_vm0, %v2076_v30 }
 0x216   :  { %520 = vperm.xlu1 %1454, %v1942_v20  }
 0x21a   :  { %535 = vperm.xlu1 %1454, %v1978_v60  }
 0x21e   :  { %525 = vperm.xlu1 %1454, %v1987_v22  }
 0x222   :  { %540 = vperm.xlu1 %1454, %v1998_v43  }
 0x226   :  { %530 = vperm.xlu1 %1454, %v2014_v38  }
 0x22a   :  { %555 = vperm.xlu1 %1454, %v2030_v41  }
 0x22e   :  { %545 = vperm.xlu1 %1454, %v2039_v46  }
 0x232   :  { %550 = vperm.xlu1 %1454, %v2059_v15  }
 0x236   :  { %565 = vperm.xlu1 %1454, %v2076_v30  }
 0x25c   :  { %v506_v35 = vpop.permute.xlu1 %505 }
 0x25d   :  { %v583_v61 = vsub.f32 %v1752_v31, %v506_v35  ;;  %v991_v18 = vsub.f32 %v975_v32, %v506_v35 }
 0x25f   :  { %v599_v2 = vmul.f32 1.442695, %v583_v61  ;;  %v1007_v49 = vmul.f32 1.442695, %v991_v18 }
 0x260   :  { %v511_v23 = vpop.permute.xlu1 %510 }
 0x261   :  { %1480 = vpow2.f32 %v599_v2  ;;  %v584_v46 = vsub.f32 %v1770_v36, %v511_v23  ;;  %v992_v41 = vsub.f32 %v976_v16, %v511_v23 }
 0x262   :  { %1482 = vpow2.f32 %v1007_v49 }
 0x263   :  { %v601_v15 = vmul.f32 1.442695, %v584_v46  ;;  %v1009_v30 = vmul.f32 1.442695, %v992_v41 }
 0x264   :  { %v516_v23 = vpop.permute.xlu0 %515 }
 0x265   :  { %1484 = vpow2.f32 %v601_v15  ;;  %v585_v15 = vsub.f32 %v1779_v40, %v516_v23 }
 0x266   :  { %1486 = vpow2.f32 %v1009_v30 }
 0x267   :  { %v603_v61 = vmul.f32 1.442695, %v585_v15 }
 0x26b   :  { %v1481_v26 = vpop.eup %1480 }
 0x26c   :  { %631 = vadd.xlane.f32.xlu0 %v1481_v26  ;;  %v1483_v19 = vpop.eup %1482 }
 0x26f   :  { %v1485_v22 = vpop.eup %1484 }
 0x270   :  { %1039 = vadd.xlane.f32.xlu0 %v1483_v19  ;;  %633 = vadd.xlane.f32.xlu1 %v1485_v22  ;;  %v1487_v31 = vpop.eup %1486 }
 0x274   :  { %1041 = vadd.xlane.f32.xlu1 %v1487_v31 }
 0x285   :  { %575 = vperm.xlu1 %1454, %v2069_v48  }
 0x286   :  { %580 = vperm.xlu0 %1455, %v2003_v58  }
 0x292   :  { %v714_v36 = vpop.xlane.xlu1 %713 }
 0x293   :  { %v2098_v46 = vadd.f32 %v714_v36, %v680_v28 }
 0x295   :  { %793 = vst.msk [vmem:[#allocation4 + $0x8] sm:$0xff] %vm61_vm0, %v2098_v46 }
 0x296   :  { %v521_v2 = vpop.permute.xlu1 %520 }
 0x297   :  { %v586_v16 = vsub.f32 %v1757_v33, %v521_v2  ;;  %v424_v2 = vsub.f32 %v1944_v21, %v1954_v25 }
 0x299   :  { %v605_v22 = vmul.f32 1.442695, %v586_v16  ;;  %v441_v16 = vmul.f32 1.442695, %v424_v2 }
 0x29a   :  { %v536_v41 = vpop.permute.xlu1 %535 }
 0x29b   :  { %1488 = vpow2.f32 %v605_v22  ;;  %v589_v26 = vsub.f32 %v1801_v47, %v536_v41  ;;  %v471_v41 = vld [vmem:[#allocation3] sm:$0xff] }
 0x29c   :  { %1490 = vpow2.f32 %v603_v61 }
 0x29e   :  { %v526_v49 = vpop.permute.xlu1 %525 }
 0x2a2   :  { %v541_v18 = vpop.permute.xlu1 %540 }
 0x2a3   :  { %v590_v33 = vsub.f32 %v1865_v59, %v541_v18 }
 0x2a5   :  { %v1489_v30 = vpop.eup %1488  ;;  %v613_v31 = vmul.f32 1.442695, %v590_v33 }
 0x2a6   :  { %637 = vadd.xlane.f32.xlu0 %v1489_v30  ;;  %v1491_v32 = vpop.eup %1490  ;;  %v531_v35 = vpop.permute.xlu1 %530 }
 0x2a7   :  { %v588_v28 = vsub.f32 %v1887_v4, %v531_v35  ;;  %1492 = vpow2.f32 %v613_v31  ;;  %v472_v35 = vld [vmem:[#allocation3 + $0x8] sm:$0xff] }
 0x2a9   :  { %635 = vadd.xlane.f32.xlu1 %v1491_v32 }
 0x2aa   :  { %715 = vadd.xlane.f32.xlu0 %v1748_v29  ;;  %v556_v40 = vpop.permute.xlu1 %555  ;;  %v561_v29 = vpop.permute.xlu0 %560 }
 0x2ad   :  { %717 = vadd.xlane.f32.xlu1 %v1761_v34  ;;  %v611_v34 = vmul.f32 1.442695, %v589_v26 }
 0x2ae   :  { %719 = vadd.xlane.f32.xlu0 %v1783_v42  ;;  %v546_v19 = vpop.permute.xlu1 %545  ;;  %v587_v42 = vsub.f32 %v1824_v56, %v526_v49  ;;  %v571_v61 = vpop.permute.xlu0 %570 }
 0x2af   :  { %1494 = vpow2.f32 %v611_v34 }
 0x2b0   :  { %v607_v47 = vmul.f32 1.442695, %v587_v42 }
 0x2b1   :  { %721 = vadd.xlane.f32.xlu1 %v1795_v45  ;;  %v594_v45 = vsub.f32 %v1914_v9, %v561_v29  ;;  %v1493_v9 = vpop.eup %1492 }
 0x2b2   :  { %723 = vadd.xlane.f32.xlu0 %v1775_v39  ;;  %v609_v39 = vmul.f32 1.442695, %v588_v28  ;;  %v551_v59 = vpop.permute.xlu1 %550 }
 0x2b3   :  { %v592_v4 = vsub.f32 %v1919_v10, %v551_v59 }
 0x2b4   :  { %1496 = vpow2.f32 %v609_v39 }
 0x2b5   :  { %725 = vadd.xlane.f32.xlu1 %v1790_v44  ;;  %v593_v44 = vsub.f32 %v1901_v7, %v556_v40  ;;  %1498 = vpow2.f32 %v607_v47  ;;  %v596_v47 = vsub.f32 %v1896_v6, %v571_v61  ;;  %v2256_v61 = vsub.f32 %v1934_v14, %v1942_v20  ;;  %v681_v20 = vld [vmem:[#allocation4 + $0x10] sm:$0xff] }
 0x2b6   :  { %727 = vadd.xlane.f32.xlu0 %v1814_v53  ;;  %v621_v53 = vmul.f32 1.442695, %v594_v45  ;;  %v566_v30 = vpop.permute.xlu1 %565 }
 0x2b7   :  { %v619_v56 = vmul.f32 1.442695, %v593_v44 }
 0x2b8   :  { %1500 = vpow2.f32 %v621_v53 }
 0x2b9   :  { %729 = vadd.xlane.f32.xlu1 %v1828_v57  ;;  %v591_v57 = vsub.f32 %v1908_v8, %v546_v19  ;;  %1502 = vpow2.f32 %v619_v56 }
 0x2ba   :  { %731 = vadd.xlane.f32.xlu0 %v1807_v50  ;;  %v617_v50 = vmul.f32 1.442695, %v592_v4  ;;  %v595_v4 = vsub.f32 %v1929_v12, %v566_v30 }
 0x2bb   :  { %v615_v7 = vmul.f32 1.442695, %v591_v57 }
 0x2bc   :  { %1504 = vpow2.f32 %v617_v50  ;;  %v625_v50 = vmul.f32 1.442695, %v596_v47  ;;  %v684_v47 = vld [vmem:[#allocation4 + $0x28] sm:$0xff] }
 0x2bd   :  { %733 = vadd.xlane.f32.xlu1 %v1820_v55  ;;  %v1495_v55 = vpop.eup %1494  ;;  %1506 = vpow2.f32 %v615_v7  ;;  %v623_v7 = vmul.f32 1.442695, %v595_v4 }
 0x2be   :  { %735 = vadd.xlane.f32.xlu0 %v1873_v0  ;;  %v1497_v10 = vpop.eup %1496 }
 0x2bf   :  { %v1499_v0 = vpop.eup %1498 }
 0x2c1   :  { %737 = vadd.xlane.f32.xlu1 %v1892_v5 }
 0x2c2   :  { %739 = vadd.xlane.f32.xlu0 %v1869_v62  ;;  %v1501_v36 = vpop.eup %1500  ;;  %v423_v62 = vsub.f32 %v1932_v13, %v1937_v17 }
 0x2c3   :  { %v1503_v8 = vpop.eup %1502 }
 0x2c4   :  { %v439_v15 = vmul.f32 1.442695, %v423_v62 }
 0x2c5   :  { %645 = vadd.xlane.f32.xlu1 %v1493_v9 }
 0x2c6   :  { %643 = vadd.xlane.f32.xlu0 %v1495_v55  ;;  %v1505_v5 = vpop.eup %1504  ;;  %1508 = vpow2.f32 %v439_v15 }
 0x2c7   :  { %v1507_v23 = vpop.eup %1506  ;;  %1510 = vpow2.f32 %v441_v16 }
 0x2c9   :  { %641 = vadd.xlane.f32.xlu1 %v1497_v10 }
 0x2ca   :  { %639 = vadd.xlane.f32.xlu0 %v1499_v0 }
 0x2cd   :  { %653 = vadd.xlane.f32.xlu1 %v1501_v36 }
 0x2ce   :  { %651 = vadd.xlane.f32.xlu0 %v1503_v8 }
 0x2d0   :  { %v1509_v22 = vpop.eup %1508 }
 0x2d1   :  { %649 = vadd.xlane.f32.xlu1 %v1505_v5  ;;  %v487_v49 = vmul.f32 %v1509_v22, %v471_v41  ;;  %v1511_v18 = vpop.eup %1510 }
 0x2d2   :  { %647 = vadd.xlane.f32.xlu0 %v1507_v23  ;;  %v488_v33 = vmul.f32 %v1511_v18, %v472_v35 }
 0x2f9   :  { %v632_v32 = vpop.xlane.xlu0 %631 }
 0x2fa   :  { %v663_v40 = vadd.f32 %v632_v32, %v487_v49  ;;  %v2257_v49 = vsub.f32 %v1956_v27, %v1964_v37 }
 0x2fc   :  { %776 = vst.msk [vmem:[#allocation3] sm:$0xff] %vm61_vm0, %v663_v40 }
 0x2fd   :  { %v1040_v13 = vpop.xlane.xlu0 %1039  ;;  %v634_v26 = vpop.xlane.xlu1 %633 }
 0x2fe   :  { %v1071_v19 = vmul.f32 8.0, %v1040_v13  ;;  %v664_v31 = vadd.f32 %v634_v26, %v488_v33  ;;  %v473_v13 = vld [vmem:[#allocation3 + $0x10] sm:$0xff] }
 0x300   :  { %v1087_v21 = vadd.f32 %v1071_v19, %v663_v40  ;;  %777 = vst.msk [vmem:[#allocation3 + $0x8] sm:$0xff] %vm61_vm0, %v664_v31  ;;  %v474_v40 = vld [vmem:[#allocation3 + $0x18] sm:$0xff] }
 0x301   :  { %v1042_v28 = vpop.xlane.xlu1 %1041 }
 0x302   :  { %v1103_v29 = vadd.f32 1e-08, %v1087_v21  ;;  %v1072_v34 = vmul.f32 8.0, %v1042_v28  ;;  %v682_v28 = vld [vmem:[#allocation4 + $0x18] sm:$0xff] }
 0x304   :  { %1512 = vlog2.f32 %v1103_v29  ;;  %v1088_v42 = vadd.f32 %v1072_v34, %v664_v31  ;;  %v683_v29 = vld [vmem:[#allocation4 + $0x20] sm:$0xff] }
 0x305   :  { %v581_v45 = vpop.permute.xlu0 %580  ;;  %v576_v39 = vpop.permute.xlu1 %575 }
 0x306   :  { %v1104_v44 = vadd.f32 1e-08, %v1088_v42  ;;  %v598_v59 = vsub.f32 %v1878_v1, %v581_v45  ;;  %v597_v53 = vsub.f32 %v1924_v11, %v576_v39 }
 0x308   :  { %1514 = vlog2.f32 %v1104_v44  ;;  %v629_v56 = vmul.f32 1.442695, %v598_v59  ;;  %v627_v57 = vmul.f32 1.442695, %v597_v53  ;;  %v685_v44 = vld [vmem:[#allocation4 + $0x30] sm:$0xff] }
 0x30a   :  { %1516 = vpow2.f32 %v629_v56  ;;  %v2258_v56 = vsub.f32 %v1989_v24, %v1998_v43 }
 0x30b   :  { %1518 = vpow2.f32 %v627_v57 }
 0x30c   :  { %1520 = vpow2.f32 %v625_v50  ;;  %v453_v57 = vmul.f32 1.442695, %v2258_v56  ;;  %v475_v56 = vld [vmem:[#allocation3 + $0x20] sm:$0xff] }
 0x30d   :  { %1522 = vpow2.f32 %v623_v7  ;;  %v686_v7 = vld [vmem:[#allocation4 + $0x38] sm:$0xff] }
 0x30e   :  { %v1513_v9 = vpop.eup %1512 }
 0x30f   :  { %v1120_v55 = vmul.f32 0.6931472, %v1513_v9  ;;  %v2259_v9 = vsub.f32 %v1973_v52, %v1978_v60 }
 0x311   :  { %v1151_v6 = vadd.f32 %v1120_v55, %v1937_v17  ;;  %v451_v55 = vmul.f32 1.442695, %v2259_v9 }
 0x312   :  { %v1515_v10 = vpop.eup %1514 }
 0x313   :  { %v1167_v0 = vmul.f32 16.0, %v1151_v6  ;;  %v1122_v1 = vmul.f32 0.6931472, %v1515_v10  ;;  %v687_v6 = vld [vmem:[#allocation4 + $0x40] sm:$0xff] }
 0x314   :  { %v1517_v36 = vpop.eup %1516 }
 0x315   :  { %v1519_v11 = vpop.eup %1518  ;;  %v1152_v12 = vadd.f32 %v1122_v1, %v1954_v25  ;;  %661 = vadd.xlane.f32.xlu1 %v1517_v36  ;;  %v1183_v8 = vsub.f32 %v1971_v51, %v1167_v0  ;;  %v445_v51 = vmul.f32 1.442695, %v2256_v61  ;;  %v2260_v36 = vsub.f32 %v2000_v54, %v2014_v38 }
 0x316   :  { %659 = vadd.xlane.f32.xlu0 %v1519_v11  ;;  %v1521_v23 = vpop.eup %1520  ;;  %v688_v11 = vld [vmem:[#allocation4 + $0x48] sm:$0xff] }
 0x317   :  { %v1168_v5 = vmul.f32 16.0, %v1152_v12  ;;  %v1523_v62 = vpop.eup %1522  ;;  %v1266_v17 = vsel %vm61_vm0, %v1183_v8, 0.0  ;;  %1524 = vpow2.f32 %v445_v51  ;;  %v449_v24 = vmul.f32 1.442695, %v2260_v36  ;;  %v2261_v12 = vld [vmem:[#allocation15_spill] sm:$0xff]  ;;  %v689_v8 = vld [vmem:[#allocation4 + $0x50] sm:$0xff] }
 0x318   :  { %v2262_v52 = vsub.f32 %v1980_v63, %v2261_v12  ;;  %v691_v51 = vld [vmem:[#allocation4 + $0x60] sm:$0xff]  ;;  %v481_v36 = vld [vmem:[#allocation3 + $0x50] sm:$0xff] }
 0x319   :  { %v1184_v15 = vsub.f32 %v2098_v46, %v1168_v5  ;;  %657 = vadd.xlane.f32.xlu1 %v1521_v23  ;;  %v443_v46 = vmul.f32 1.442695, %v2257_v49 }
 0x31a   :  { %655 = vadd.xlane.f32.xlu0 %v1523_v62  ;;  %v447_v60 = vmul.f32 1.442695, %v2262_v52 }
 0x31b   :  { %v1267_v2 = vsel %vm61_vm0, %v1184_v15, 0.0  ;;  %1526 = vpow2.f32 %v443_v46  ;;  %v2263_v15 = vld [vmem:[#allocation23_spill] sm:$0xff] }
 0x31c   :  { %v1268_v16 = vadd.f32 %v1267_v2, %v1266_v17  ;;  %1528 = vpow2.f32 %v453_v57  ;;  %v2264_v17 = vld [vmem:[#allocation24_spill] sm:$0xff] }
 0x31d   :  { %741 = vadd.xlane.f32.xlu1 %v1882_v3  ;;  %1530 = vpow2.f32 %v451_v55  ;;  %v2265_v54 = vsub.f32 %v2263_v15, %v2264_v17 }
 0x31e   :  { %v1297_v22 = vrot.slane %v1268_v16, 4  ;;  %1532 = vpow2.f32 %v449_v24 }
 0x31f   :  { %v461_v38 = vmul.f32 1.442695, %v2265_v54  ;;  %1534 = vpow2.f32 %v447_v60  ;;  %v480_v60 = vld [vmem:[#allocation3 + $0x48] sm:$0xff] }
 0x320   :  { %v1298_v25 = vadd.f32 %v1297_v22, %v1268_v16  ;;  %v690_v16 = vld [vmem:[#allocation4 + $0x58] sm:$0xff] }
 0x321   :  { %v1525_v35 = vpop.eup %1524  ;;  %v2266_v22 = vld [vmem:[#allocation18_spill] sm:$0xff]  ;;  %1536 = vpow2.f32 %v461_v38 }
 0x322   :  { %v1299_v41 = vrot.slane %v1298_v25, 2  ;;  %v490_v33 = vmul.f32 %v1525_v35, %v474_v40 }
 0x324   :  { %v1300_v18 = vadd.f32 %v1299_v41, %v1298_v25  ;;  %v2267_v25 = vld [vmem:[#allocation20_spill] sm:$0xff] }
 0x325   :  { %v1527_v3 = vpop.eup %1526  ;;  %v2268_v63 = vsub.f32 %v2266_v22, %v2267_v25  ;;  %v2275_v25 = vld [vmem:[#allocation16_spill] sm:$0xff] }
 0x326   :  { %v1301_v30 = vrot.slane %v1300_v18, 1  ;;  %v489_v14 = vmul.f32 %v1527_v3, %v473_v13  ;;  %v692_v3 = vld [vmem:[#allocation4 + $0x68] sm:$0xff]  ;;  %v2273_v13 = vld [vmem:[#allocation22_spill] sm:$0xff] }
 0x327   :  { %v459_v61 = vmul.f32 1.442695, %v2268_v63  ;;  %v438_v63 = vsub.f32 %v2275_v25, %v2003_v58 }
 0x328   :  { %v1302_v32 = vadd.f32 %v1301_v30, %v1300_v18  ;;  %v2269_v18 = vld [vmem:[#allocation25_spill] sm:$0xff]  ;;  %v2270_v30 = vld [vmem:[#allocation26_spill] sm:$0xff] }
 0x329   :  { %1538 = vpow2.f32 %v459_v61  ;;  %v2276_v61 = vld [vmem:[#allocation27_spill] sm:$0xff] }
 0x330   :  { %1305 = vperm.xlu0 %1455, %v1302_v32   ;;  %v2271_v32 = vsub.f32 %v2269_v18, %v2270_v30  ;;  %v2278_v18 = vld [vmem:[#allocation19_spill] sm:$0xff] }
 0x332   :  { %v457_v35 = vmul.f32 1.442695, %v2271_v32 }
 0x333   :  { %v638_v26 = vpop.xlane.xlu0 %637 }
 0x334   :  { %v666_v19 = vadd.f32 %v638_v26, %v490_v33  ;;  %v2272_v33 = vld [vmem:[#allocation21_spill] sm:$0xff]  ;;  %1540 = vpow2.f32 %v457_v35  ;;  %v2280_v35 = vld [vmem:[#allocation28_spill] sm:$0xff] }
 0x335   :  { %v2274_v26 = vsub.f32 %v2272_v33, %v2273_v13 }
 0x336   :  { %779 = vst.msk [vmem:[#allocation3 + $0x18] sm:$0xff] %vm61_vm0, %v666_v19  ;;  %v636_v31 = vpop.xlane.xlu1 %635 }
 0x337   :  { %v665_v27 = vadd.f32 %v636_v31, %v489_v14  ;;  %v716_v37 = vpop.xlane.xlu0 %715  ;;  %v455_v19 = vmul.f32 1.442695, %v2274_v26  ;;  %v693_v14 = vld [vmem:[#allocation4 + $0x70] sm:$0xff]  ;;  %v486_v26 = vld [vmem:[#allocation3 + $0x78] sm:$0xff] }
 0x338   :  { %v745_v21 = vadd.f32 %v716_v37, %v681_v20  ;;  %v1529_v20 = vpop.eup %1528 }
 0x339   :  { %778 = vst.msk [vmem:[#allocation3 + $0x10] sm:$0xff] %vm61_vm0, %v665_v27  ;;  %v478_v27 = vld [vmem:[#allocation3 + $0x38] sm:$0xff]  ;;  %v1531_v37 = vpop.eup %1530  ;;  %1542 = vpow2.f32 %v455_v19  ;;  %v485_v19 = vld [vmem:[#allocation3 + $0x70] sm:$0xff] }
 0x33a   :  { %794 = vst.msk [vmem:[#allocation4 + $0x10] sm:$0xff] %vm61_vm0, %v745_v21  ;;  %v718_v34 = vpop.xlane.xlu1 %717 }
 0x33b   :  { %v746_v42 = vadd.f32 %v718_v34, %v682_v28  ;;  %v720_v45 = vpop.xlane.xlu0 %719 }
 0x33c   :  { %v747_v39 = vadd.f32 %v720_v45, %v683_v29  ;;  %v477_v29 = vld [vmem:[#allocation3 + $0x30] sm:$0xff]  ;;  %v1533_v45 = vpop.eup %1532 }
 0x33d   :  { %795 = vst.msk [vmem:[#allocation4 + $0x18] sm:$0xff] %vm61_vm0, %v746_v42  ;;  %v494_v42 = vmul.f32 %v1529_v20, %v478_v27  ;;  %v484_v27 = vld [vmem:[#allocation3 + $0x68] sm:$0xff] }
 0x33e   :  { %796 = vst.msk [vmem:[#allocation4 + $0x20] sm:$0xff] %vm61_vm0, %v747_v39  ;;  %v722_v59 = vpop.xlane.xlu1 %721 }
 0x33f   :  { %v748_v53 = vadd.f32 %v722_v59, %v684_v47  ;;  %v724_v4 = vpop.xlane.xlu0 %723  ;;  %v493_v47 = vmul.f32 %v1531_v37, %v477_v29  ;;  %v1535_v59 = vpop.eup %1534  ;;  %v483_v29 = vld [vmem:[#allocation3 + $0x60] sm:$0xff] }
 0x340   :  { %v749_v50 = vadd.f32 %v724_v4, %v685_v44  ;;  %v476_v44 = vld [vmem:[#allocation3 + $0x28] sm:$0xff]  ;;  %v491_v55 = vmul.f32 %v1535_v59, %v475_v56 }
 0x341   :  { %797 = vst.msk [vmem:[#allocation4 + $0x28] sm:$0xff] %vm61_vm0, %v748_v53 }
 0x342   :  { %798 = vst.msk [vmem:[#allocation4 + $0x30] sm:$0xff] %vm61_vm0, %v749_v50  ;;  %v726_v10 = vpop.xlane.xlu1 %725  ;;  %v492_v50 = vmul.f32 %v1533_v45, %v476_v44 }
 0x343   :  { %v750_v0 = vadd.f32 %v726_v10, %v686_v7  ;;  %v728_v1 = vpop.xlane.xlu0 %727  ;;  %v1537_v7 = vpop.eup %1536 }
 0x344   :  { %v751_v43 = vadd.f32 %v728_v1, %v687_v6  ;;  %v482_v6 = vld [vmem:[#allocation3 + $0x58] sm:$0xff]  ;;  %v1539_v10 = vpop.eup %1538 }
 0x345   :  { %799 = vst.msk [vmem:[#allocation4 + $0x38] sm:$0xff] %vm61_vm0, %v750_v0  ;;  %v497_v52 = vmul.f32 %v1539_v10, %v481_v36 }
 0x346   :  { %800 = vst.msk [vmem:[#allocation4 + $0x40] sm:$0xff] %vm61_vm0, %v751_v43  ;;  %v730_v5 = vpop.xlane.xlu1 %729  ;;  %v498_v43 = vmul.f32 %v1537_v7, %v482_v6 }
 0x347   :  { %v752_v23 = vadd.f32 %v730_v5, %v688_v11  ;;  %v732_v62 = vpop.xlane.xlu0 %731  ;;  %v1541_v11 = vpop.eup %1540 }
 0x348   :  { %v753_v2 = vadd.f32 %v732_v62, %v689_v8  ;;  %v1543_v8 = vpop.eup %1542  ;;  %v479_v62 = vld [vmem:[#allocation3 + $0x40] sm:$0xff]  ;;  %v496_v17 = vmul.f32 %v1541_v11, %v480_v60 }
 0x349   :  { %801 = vst.msk [vmem:[#allocation4 + $0x48] sm:$0xff] %vm61_vm0, %v752_v23  ;;  %v495_v38 = vmul.f32 %v1543_v8, %v479_v62 }
 0x34a   :  { %802 = vst.msk [vmem:[#allocation4 + $0x50] sm:$0xff] %vm61_vm0, %v753_v2  ;;  %v734_v41 = vpop.xlane.xlu1 %733 }
 0x34b   :  { %v754_v49 = vadd.f32 %v734_v41, %v690_v16  ;;  %v736_v46 = vpop.xlane.xlu0 %735  ;;  %v469_v41 = vmul.f32 1.442695, %v438_v63 }
 0x34c   :  { %v755_v40 = vadd.f32 %v736_v46, %v691_v51  ;;  %v437_v51 = vsub.f32 %v2276_v61, %v2069_v48  ;;  %v2277_v46 = vld [vmem:[#allocation17_spill] sm:$0xff] }
 0x34d   :  { %803 = vst.msk [vmem:[#allocation4 + $0x58] sm:$0xff] %vm61_vm0, %v754_v49  ;;  %1544 = vpow2.f32 %v469_v41  ;;  %v2279_v30 = vsub.f32 %v2277_v46, %v2278_v18 }
 0x34e   :  { %804 = vst.msk [vmem:[#allocation4 + $0x60] sm:$0xff] %vm61_vm0, %v755_v40  ;;  %v738_v31 = vpop.xlane.xlu1 %737  ;;  %v467_v49 = vmul.f32 1.442695, %v437_v51  ;;  %v2281_v40 = vld [vmem:[#allocation29_spill] sm:$0xff] }
 0x34f   :  { %v756_v21 = vadd.f32 %v738_v31, %v692_v3  ;;  %v740_v28 = vpop.xlane.xlu0 %739  ;;  %v465_v32 = vmul.f32 1.442695, %v2279_v30  ;;  %v2282_v3 = vsub.f32 %v2280_v35, %v2281_v40 }
 0x350   :  { %v757_v34 = vadd.f32 %v740_v28, %v693_v14  ;;  %1546 = vpow2.f32 %v467_v49 }
 0x351   :  { %805 = vst.msk [vmem:[#allocation4 + $0x68] sm:$0xff] %vm61_vm0, %v756_v21  ;;  %v463_v33 = vmul.f32 1.442695, %v2282_v3  ;;  %1548 = vpow2.f32 %v465_v32 }
 0x352   :  { %806 = vst.msk [vmem:[#allocation4 + $0x70] sm:$0xff] %vm61_vm0, %v757_v34  ;;  %v646_v39 = vpop.xlane.xlu1 %645 }
 0x353   :  { %v670_v53 = vadd.f32 %v646_v39, %v494_v42  ;;  %v644_v4 = vpop.xlane.xlu0 %643  ;;  %1550 = vpow2.f32 %v463_v33 }
 0x354   :  { %v669_v57 = vadd.f32 %v644_v4, %v493_v47 }
 0x355   :  { %783 = vst.msk [vmem:[#allocation3 + $0x38] sm:$0xff] %vm61_vm0, %v670_v53  ;;  %v694_v53 = vld [vmem:[#allocation4 + $0x78] sm:$0xff] }
 0x356   :  { %782 = vst.msk [vmem:[#allocation3 + $0x30] sm:$0xff] %vm61_vm0, %v669_v57  ;;  %v642_v9 = vpop.xlane.xlu1 %641 }
 0x357   :  { %v668_v0 = vadd.f32 %v642_v9, %v492_v50  ;;  %v640_v1 = vpop.xlane.xlu0 %639  ;;  %v1545_v13 = vpop.eup %1544 }
 0x358   :  { %v667_v24 = vadd.f32 %v640_v1, %v491_v55  ;;  %v502_v14 = vmul.f32 %v1545_v13, %v486_v26 }
 0x359   :  { %781 = vst.msk [vmem:[#allocation3 + $0x28] sm:$0xff] %vm61_vm0, %v668_v0 }
 0x35a   :  { %780 = vst.msk [vmem:[#allocation3 + $0x20] sm:$0xff] %vm61_vm0, %v667_v24  ;;  %v654_v12 = vpop.xlane.xlu1 %653  ;;  %v1547_v58 = vpop.eup %1546 }
 0x35b   :  { %v674_v5 = vadd.f32 %v654_v12, %v498_v43  ;;  %v652_v23 = vpop.xlane.xlu0 %651  ;;  %v1549_v48 = vpop.eup %1548  ;;  %v501_v20 = vmul.f32 %v1547_v58, %v485_v19 }
 0x35c   :  { %v673_v15 = vadd.f32 %v652_v23, %v497_v52  ;;  %v500_v42 = vmul.f32 %v1549_v48, %v484_v27 }
 0x35d   :  { %787 = vst.msk [vmem:[#allocation3 + $0x58] sm:$0xff] %vm61_vm0, %v674_v5  ;;  %v1551_v37 = vpop.eup %1550 }
 0x35e   :  { %786 = vst.msk [vmem:[#allocation3 + $0x50] sm:$0xff] %vm61_vm0, %v673_v15  ;;  %v650_v54 = vpop.xlane.xlu1 %649  ;;  %v499_v45 = vmul.f32 %v1551_v37, %v483_v29 }
 0x35f   :  { %v672_v2 = vadd.f32 %v650_v54, %v496_v17  ;;  %v648_v16 = vpop.xlane.xlu0 %647 }
 0x360   :  { %v671_v22 = vadd.f32 %v648_v16, %v495_v38 }
 0x361   :  { %785 = vst.msk [vmem:[#allocation3 + $0x48] sm:$0xff] %vm61_vm0, %v672_v2 }
 0x362   :  { %784 = vst.msk [vmem:[#allocation3 + $0x40] sm:$0xff] %vm61_vm0, %v671_v22 }
 0x3a2   :  { %v662_v31 = vpop.xlane.xlu1 %661 }
 0x3a3   :  { %v660_v21 = vpop.xlane.xlu0 %659  ;;  %v678_v28 = vadd.f32 %v662_v31, %v502_v14 }
 0x3a4   :  { %v677_v34 = vadd.f32 %v660_v21, %v501_v20 }
 0x3a5   :  { %791 = vst.msk [vmem:[#allocation3 + $0x78] sm:$0xff] %vm61_vm0, %v678_v28 }
 0x3a6   :  { %790 = vst.msk [vmem:[#allocation3 + $0x70] sm:$0xff] %vm61_vm0, %v677_v34  ;;  %v658_v39 = vpop.xlane.xlu1 %657 }
 0x3a7   :  { %v656_v47 = vpop.xlane.xlu0 %655  ;;  %v676_v44 = vadd.f32 %v658_v39, %v500_v42 }
 0x3a8   :  { %v675_v59 = vadd.f32 %v656_v47, %v499_v45 }
 0x3a9   :  { %789 = vst.msk [vmem:[#allocation3 + $0x68] sm:$0xff] %vm61_vm0, %v676_v44 }
 0x3aa   :  { %788 = vst.msk [vmem:[#allocation3 + $0x60] sm:$0xff] %vm61_vm0, %v675_v59  ;;  %v742_v4 = vpop.xlane.xlu1 %741 }
 0x3ab   :  { %v758_v56 = vadd.f32 %v742_v4, %v694_v53 }
 0x3ad   :  { %807 = vst.msk [vmem:[#allocation4 + $0x78] sm:$0xff] %vm61_vm0, %v758_v56 }
 0x3af   :  { %v1306_v57 = vpop.permute.xlu0 %1305 }
 0x3b0   :  { %1308 = vst [vmem:[#allocation11] sm:$0x1] %v1306_v57 }
 0x3b1   :  { %1629 = shalt.err (!%p1626_p0)
}
 0x3b2   :  { %s1630_s26 = scalar_lea.hbm %s2225_s3, 16 }
 0x3b3   :  { %p1631_p1 = scmp.ne.s32.totalorder %s2225_s3, %s1630_s26  ;;  %p1634_p2 = scmp.lt.u32.totalorder %s1630_s26, %s2225_s3 }
 0x3b5   :  { %p1636_p3 = pnand %p1634_p2, %p1631_p1 }
 0x3b7   :  { %1639 = shalt.err (!%p1636_p3)
}
 0x3b8   :  { %1318 = dma.vmem_to_hbm [thread:$0]  %s1316_s21, 16, %s2225_s3, [#allocation7]  }
 0x3b9   :  { %1644 = dma.done.wait [#allocation7], 16  }
 0x3ba   :  { %1645 = vsyncadd [#allocation7], 4294967280 }
 0x3bb   :  { %1322 = vsyncpa [#allocation6], 1 }
 0x3bc   :  { %1323 = vsyncpa [#allocation9], 1 }
 0x3bd   :  { %1324 = vsyncpa [#allocation7], 1 }

</bundles_post_ra>
